<compile_context>
chip_gen: v6e
topology: v6e:2x2x1
jax: 0.10.0
libtpu: 0.0.40
codegen_flags: <defaults>
</compile_context>

<pallas_src>
import jax
import jax.numpy as jnp
from jax.experimental import pallas as pl
from jax.experimental.pallas import tpu as pltpu


def _feature_extractor_kernel(patch_ref, wconv_ref, bconv_ref, wfc_ref, bfc_ref, out_ref):
    # patch_ref: (b_blk*HW, 9*Cin)   bf16  im2col patch rows for this batch block
    # wconv_ref: (9*Cin, Cout_pad)   bf16  conv weights, tap-major rows
    # bconv_ref: (1, Cout_pad)       f32
    # wfc_ref  : (Cout_pad, NC_pad)  bf16
    # bfc_ref  : (1, NC_pad)         f32
    # out_ref  : (1, b_blk, NC_pad)  f32
    m = patch_ref.shape[0]
    cout_p = wconv_ref.shape[1]
    b_blk = out_ref.shape[1]
    hw = m // b_blk

    # Fused 3x3 "same" conv: ONE bf16 x bf16 -> f32 MXU matmul (K = 9*Cin),
    # then bias + ReLU on the f32 accumulator.
    conv = jnp.dot(patch_ref[...], wconv_ref[...],
                   preferred_element_type=jnp.float32)              # (M, Cout_pad)
    conv = jnp.maximum(conv + bconv_ref[...], 0.0)

    # AdaptiveAvgPool2d(1) + flatten: per-image sublane reduction (XLU/VPU
    # slots; the MXU is idle here, so this is effectively free filler).
    pooled = conv.reshape(b_blk, hw, cout_p).sum(axis=1) * (1.0 / hw)  # (b_blk, Cout_pad)

    # Final fc: bf16 weights, f32 accumulate; lane-dense (128-wide) padded store.
    logits = jnp.dot(pooled.astype(jnp.bfloat16), wfc_ref[...],
                     preferred_element_type=jnp.float32) + bfc_ref[...]
    out_ref[...] = logits[None]                                     # (1, b_blk, NC_pad)


def _num_tensorcores():
    """2 on v7x (dual TensorCore), else 1 (v5e/v6e are single-TC)."""
    try:
        kind = jax.devices()[0].device_kind.lower()
    except Exception:
        return 1
    return 2 if ("v7" in kind or "7x" in kind) else 1


def feature_extractor(x_nchw, wconv_oihw, bconv, wfc, bfc):
    """x_nchw: (B, Cin, H, W) float32. Returns fc(features(x))[:, :-1] -> (B, NUM_CLASSES-1)."""
    B, Cin, H, W = x_nchw.shape
    Cout = wconv_oihw.shape[0]
    NC = wfc.shape[0]
    HW = H * W
    K9 = 9 * Cin

    def _rup(v, m):
        return (v + m - 1) // m * m

    cout_pad = _rup(Cout, 128)
    nc_pad = _rup(NC, 128)

    # Generation-aware batch blocking: the grid is a sequential loop on 1-TC
    # chips, so fold the whole batch into matmul M there; only split into two
    # blocks on v7x so both TensorCores get a block via "parallel" semantics.
    if _num_tensorcores() >= 2 and B % 2 == 0:
        b_blk = B // 2
    else:
        b_blk = B
    assert B % b_blk == 0
    n_blocks = B // b_blk

    # ---- wrapper-side layout glue (pure data movement, no compute hoisting) ----
    x = jnp.transpose(x_nchw, (0, 2, 3, 1))                          # NHWC
    xp = jnp.pad(x, ((0, 0), (1, 1), (1, 1), (0, 0)))                # (B, H+2, W+2, Cin)
    # Pre-interleave to the im2col patch layout with the 9*Cin axis last
    # (lane-dense): patches[(b,y,x), tap*Cin + c] = xp[b, y+dy, x+dx, c].
    taps = [xp[:, dy:dy + H, dx:dx + W, :] for dy in range(3) for dx in range(3)]
    patches = jnp.concatenate(taps, axis=-1).reshape(B * HW, K9).astype(jnp.bfloat16)

    # Conv weights OIHW -> (ky, kx, ci, co) -> (9*Cin, Cout_pad) bf16, tap-major rows
    # matching the patch column order.
    w_conv = jnp.transpose(wconv_oihw, (2, 3, 1, 0)).reshape(K9, Cout)
    w_conv = jnp.pad(w_conv, ((0, 0), (0, cout_pad - Cout))).astype(jnp.bfloat16)
    bconv_p = jnp.pad(bconv.astype(jnp.float32), (0, cout_pad - Cout)).reshape(1, cout_pad)
    w_fc = jnp.pad(wfc.T, ((0, cout_pad - Cout), (0, nc_pad - NC))).astype(jnp.bfloat16)
    bfc_p = jnp.pad(bfc.astype(jnp.float32), (0, nc_pad - NC)).reshape(1, nc_pad)

    cost = pl.CostEstimate(
        flops=(2 * B * HW * K9 * cout_pad        # fused conv matmul
               + B * HW * cout_pad               # global-avg-pool reduction
               + 2 * B * cout_pad * nc_pad),     # fc matmul
        transcendentals=0,
        bytes_accessed=(patches.size * 2 + w_conv.size * 2 + w_fc.size * 2
                        + (bconv_p.size + bfc_p.size) * 4
                        + n_blocks * b_blk * nc_pad * 4),
    )

    out = pl.pallas_call(
        _feature_extractor_kernel,
        out_shape=jax.ShapeDtypeStruct((n_blocks, b_blk, nc_pad), jnp.float32),
        grid_spec=pltpu.PrefetchScalarGridSpec(
            num_scalar_prefetch=0,
            grid=(n_blocks,),
            in_specs=[
                pl.BlockSpec((b_blk * HW, K9), lambda b: (b, 0)),
                pl.BlockSpec((K9, cout_pad), lambda b: (0, 0)),
                pl.BlockSpec((1, cout_pad), lambda b: (0, 0)),
                pl.BlockSpec((cout_pad, nc_pad), lambda b: (0, 0)),
                pl.BlockSpec((1, nc_pad), lambda b: (0, 0)),
            ],
            out_specs=pl.BlockSpec((1, b_blk, nc_pad), lambda b: (b, 0, 0)),
        ),
        compiler_params=pltpu.CompilerParams(
            dimension_semantics=("parallel",),
            vmem_limit_bytes=32 * 1024 * 1024,
        ),
        cost_estimate=cost,
    )(patches, w_conv, bconv_p, w_fc, bfc_p)

    logits = out.reshape(B, nc_pad)[:, :NC]        # drop lane padding
    return logits[:, :NC - 1]                      # mirror `return x[:, :-1]`


def _reference(x_nchw, wconv_oihw, bconv, wfc, bfc):
    y = jax.lax.conv_general_dilated(
        x_nchw, wconv_oihw, window_strides=(1, 1), padding="SAME",
        dimension_numbers=("NCHW", "OIHW", "NCHW"))
    y = y + bconv[None, :, None, None]
    y = jnp.maximum(y, 0.0)
    y = jnp.mean(y, axis=(2, 3))            # global avg pool + flatten
    y = y @ wfc.T + bfc                     # fc
    return y[:, :-1]


if __name__ == "__main__":
    B, Cin, H, W = 2, 4, 16, 16
    Cout, NUM_CLASSES = 8, 10

    key = jax.random.PRNGKey(0)
    kx, kw, kb, kfw, kfb = jax.random.split(key, 5)
    x = jax.random.normal(kx, (B, Cin, H, W), dtype=jnp.float32)
    wconv = jax.random.normal(kw, (Cout, Cin, 3, 3), dtype=jnp.float32) * 0.1
    bconv = jax.random.normal(kb, (Cout,), dtype=jnp.float32) * 0.1
    wfc = jax.random.normal(kfw, (NUM_CLASSES, Cout), dtype=jnp.float32) * 0.1
    bfc = jax.random.normal(kfb, (NUM_CLASSES,), dtype=jnp.float32) * 0.1

    out = jax.block_until_ready(feature_extractor(x, wconv, bconv, wfc, bfc))
    ref = jax.block_until_ready(_reference(x, wconv, bconv, wfc, bfc))

    assert out.shape == (B, NUM_CLASSES - 1), out.shape
    # Tolerance accounts for bf16 HBM operands (patches / conv / fc weights,
    # pooled activations); all matmul accumulation stays f32.
    assert jnp.allclose(out, ref, rtol=2e-2, atol=5e-3), (out, ref)

    print("KERNEL_OK")
</pallas_src>

<mosaic_0001>
module attributes {stable_mosaic.version = 11 : i64} {
  func.func @_feature_extractor_kernel(%arg0: i32, %arg1: memref<512x36xbf16, #tpu.memory_space<vmem>>, %arg2: memref<36x128xbf16, #tpu.memory_space<vmem>>, %arg3: memref<1x128xf32, #tpu.memory_space<vmem>>, %arg4: memref<128x128xbf16, #tpu.memory_space<vmem>>, %arg5: memref<1x128xf32, #tpu.memory_space<vmem>>, %arg6: memref<1x2x128xf32, #tpu.memory_space<vmem>>) attributes {dimension_semantics = [#tpu.dimension_semantics<parallel>], iteration_bounds = array<i64: 1>, scalar_prefetch = 0 : i64, scratch_operands = 0 : i64, tpu.core_type = #tpu.core_type<tc>, window_params = [{transform_indices = @transform_0, window_bounds = array<i64: 512, 36>}, {pipeline_mode = #tpu.pipeline_mode<synchronous>, transform_indices = @transform_1, window_bounds = array<i64: 36, 128>}, {pipeline_mode = #tpu.pipeline_mode<synchronous>, transform_indices = @transform_2, window_bounds = array<i64: 1, 128>}, {pipeline_mode = #tpu.pipeline_mode<synchronous>, transform_indices = @transform_3, window_bounds = array<i64: 128, 128>}, {pipeline_mode = #tpu.pipeline_mode<synchronous>, transform_indices = @transform_4, window_bounds = array<i64: 1, 128>}, {transform_indices = @transform_5, window_bounds = array<i64: 1, 2, 128>}]} {
    %c0 = arith.constant 0 : index
    %c0_0 = arith.constant 0 : index
    %0 = vector.load %arg1[%c0, %c0_0] : memref<512x36xbf16, #tpu.memory_space<vmem>>, vector<512x36xbf16>
    %c0_1 = arith.constant 0 : index
    %c0_2 = arith.constant 0 : index
    %1 = vector.load %arg2[%c0_1, %c0_2] : memref<36x128xbf16, #tpu.memory_space<vmem>>, vector<36x128xbf16>
    %cst = arith.constant dense<0.000000e+00> : vector<512x128xf32>
    %2 = tpu.matmul %0, %1, %cst {dimension_numbers = #tpu.dot_dimension_numbers<[1], [0], [0], [1], [0, 0, 1, 1], [], []>} : vector<512x36xbf16>, vector<36x128xbf16>, vector<512x128xf32> -> vector<512x128xf32>
    %c0_3 = arith.constant 0 : index
    %c0_4 = arith.constant 0 : index
    %3 = vector.load %arg3[%c0_3, %c0_4] : memref<1x128xf32, #tpu.memory_space<vmem>>, vector<1x128xf32>
    %4 = vector.broadcast %3 : vector<1x128xf32> to vector<512x128xf32>
    %5 = arith.addf %2, %4 : vector<512x128xf32>
    %cst_5 = arith.constant 0.000000e+00 : f32
    %6 = vector.broadcast %cst_5 : f32 to vector<512x128xf32>
    %7 = arith.maximumf %5, %6 : vector<512x128xf32>
    %8 = vector.shape_cast %7 : vector<512x128xf32> to vector<2x256x128xf32>
    %cst_6 = arith.constant dense<0.000000e+00> : vector<2x128xf32>
    %9 = vector.multi_reduction <add>, %8, %cst_6 [1] : vector<2x256x128xf32> to vector<2x128xf32>
    %cst_7 = arith.constant 3.906250e-03 : f32
    %10 = vector.broadcast %cst_7 : f32 to vector<2x128xf32>
    %11 = arith.mulf %9, %10 : vector<2x128xf32>
    %12 = arith.truncf %11 : vector<2x128xf32> to vector<2x128xbf16>
    %c0_8 = arith.constant 0 : index
    %c0_9 = arith.constant 0 : index
    %13 = vector.load %arg4[%c0_8, %c0_9] : memref<128x128xbf16, #tpu.memory_space<vmem>>, vector<128x128xbf16>
    %cst_10 = arith.constant dense<0.000000e+00> : vector<2x128xf32>
    %14 = tpu.matmul %12, %13, %cst_10 {dimension_numbers = #tpu.dot_dimension_numbers<[1], [0], [0], [1], [0, 0, 1, 1], [], []>} : vector<2x128xbf16>, vector<128x128xbf16>, vector<2x128xf32> -> vector<2x128xf32>
    %c0_11 = arith.constant 0 : index
    %c0_12 = arith.constant 0 : index
    %15 = vector.load %arg5[%c0_11, %c0_12] : memref<1x128xf32, #tpu.memory_space<vmem>>, vector<1x128xf32>
    %16 = vector.broadcast %15 : vector<1x128xf32> to vector<2x128xf32>
    %17 = arith.addf %14, %16 : vector<2x128xf32>
    %18 = vector.shape_cast %17 : vector<2x128xf32> to vector<1x2x128xf32>
    %c0_13 = arith.constant 0 : index
    %c0_14 = arith.constant 0 : index
    %c0_15 = arith.constant 0 : index
    %19 = vector.load %arg6[%c0_13, %c0_14, %c0_15] : memref<1x2x128xf32, #tpu.memory_space<vmem>>, vector<1x2x128xf32>
    tpu.vector_store %arg6[%c0_13, %c0_14, %c0_15], %18 {strides = array<i32>} : memref<1x2x128xf32, #tpu.memory_space<vmem>>, vector<1x2x128xf32>,
    return
  }
  func.func @transform_0(%arg0: i32) -> (i32, i32) {
    %c0_i32 = arith.constant 0 : i32
    %c0_i32_0 = arith.constant 0 : i32
    return %arg0, %c0_i32 : i32, i32
  }
  func.func @transform_1(%arg0: i32) -> (i32, i32) {
    %c0_i32 = arith.constant 0 : i32
    %c0_i32_0 = arith.constant 0 : i32
    %c0_i32_1 = arith.constant 0 : i32
    return %c0_i32, %c0_i32_0 : i32, i32
  }
  func.func @transform_2(%arg0: i32) -> (i32, i32) {
    %c0_i32 = arith.constant 0 : i32
    %c0_i32_0 = arith.constant 0 : i32
    %c0_i32_1 = arith.constant 0 : i32
    return %c0_i32, %c0_i32_0 : i32, i32
  }
  func.func @transform_3(%arg0: i32) -> (i32, i32) {
    %c0_i32 = arith.constant 0 : i32
    %c0_i32_0 = arith.constant 0 : i32
    %c0_i32_1 = arith.constant 0 : i32
    return %c0_i32, %c0_i32_0 : i32, i32
  }
  func.func @transform_4(%arg0: i32) -> (i32, i32) {
    %c0_i32 = arith.constant 0 : i32
    %c0_i32_0 = arith.constant 0 : i32
    %c0_i32_1 = arith.constant 0 : i32
    return %c0_i32, %c0_i32_0 : i32, i32
  }
  func.func @transform_5(%arg0: i32) -> (i32, i32, i32) {
    %c0_i32 = arith.constant 0 : i32
    %c0_i32_0 = arith.constant 0 : i32
    %c0_i32_1 = arith.constant 0 : i32
    return %arg0, %c0_i32, %c0_i32_0 : i32, i32, i32
  }
}

</mosaic_0001>

<bundles_post_ra>
// kernel: tpu_custom_call.1
= control target key start
LH: loop header
LB: loop body
LE: loop exit
PB: predicated region body
PF: predicated region fallthrough
CT: control target
= control target key end

     0   :  { %vm370_vm0 = vcmask 1041408   ;;  %vm273_vm1 = vcmask 293888   ;;  %s1547_s0 = inlined_call_operand.vmem [shape: bf16[512,36], index: 0, kind: input, shape index: {}]   ;;  %s1548_s1 = inlined_call_operand.vmem [shape: bf16[36,128], index: 1, kind: input, shape index: {}]   ;;  %s1549_s2 = inlined_call_operand.vmem [shape: f32[1,128], index: 2, kind: input, shape index: {}]   ;;  %s1550_s3 = inlined_call_operand.vmem [shape: bf16[128,128], index: 3, kind: input, shape index: {}]   ;;  %s1551_s4 = inlined_call_operand.vmem [shape: f32[1,128], index: 4, kind: input, shape index: {}]   ;;  %s1552_s5 = inlined_call_operand.hbm [shape: f32[1,2,128], index: 5, kind: output, shape index: {}]  }
   0x1   :  { %v1161_v0 = vld [vmem:[%s1548_s1 + $0x10] ss:$0 sps:$4 sm:$0x33]   ;;  %v1162_v1 = vld [vmem:[%s1548_s1 + $0x8] sm:$0xff]   ;;  %v1164_v3 = vld [vmem:[%s1547_s0] sm:$0xff]  }
   0x2   :  { %1156 = vmatprep.subr.msk.bf16.mxu0 %vm370_vm0, %v1161_v0  ;;  %v372_v2 = vsel %vm370_vm0, %v1161_v0, 0  ;;  %1157 = vmatprep.subr.msk.bf16.mxu1 %vm370_vm0, %v1161_v0  ;;  %v1163_v4 = vld [vmem:[%s1548_s1] sm:$0xff]   ;;  %v1165_v5 = vld [vmem:[%s1547_s0 + $0x8] sm:$0xff]   ;;  %v1166_v6 = vld [vmem:[%s1547_s0 + $0x10] sm:$0xff]  }
   0x3   :  { %1061 = vmatpush3.bf16.msra.mxu0 %v372_v2  ;;  %1153 = vmatpush3.bf16.msra.mxu1 %v372_v2  ;;  %v1167_v7 = vld [vmem:[%s1547_s0 + $0x18] sm:$0xff]   ;;  %v1168_v8 = vld [vmem:[%s1547_s0 + $0x20] sm:$0xff]   ;;  %v1182_v9 = vld [vmem:[%s1547_s0 + $0x90] sm:$0xff]  }
   0x4   :  { %1062 = vmatprep.subr.bf16.mxu0 %v1162_v1  ;;  %1151 = vmatprep.subr.bf16.mxu1 %v1162_v1  ;;  %v1183_v10 = vld [vmem:[%s1547_s0 + $0x98] sm:$0xff]   ;;  %v1184_v11 = vld [vmem:[%s1547_s0 + $0xa0] sm:$0xff]   ;;  %v1169_v12 = vld [vmem:[%s1547_s0 + $0x28] sm:$0xff]  }
   0x5   :  { %1066 = vmatprep.mubr.msk.bf16.mxu0 %vm273_vm1, %v1164_v3  ;;  %1102 = vmatprep.mubr.msk.bf16.mxu1 %vm273_vm1, %v1182_v9  ;;  %v1170_v13 = vld [vmem:[%s1547_s0 + $0x30] sm:$0xff]   ;;  %v1185_v14 = vld [vmem:[%s1547_s0 + $0xa8] sm:$0xff]   ;;  %v1171_v16 = vld [vmem:[%s1547_s0 + $0x38] sm:$0xff]  }
   0x6   :  { %v1186_v15 = vld [vmem:[%s1547_s0 + $0xb0] sm:$0xff]   ;;  %v1172_v17 = vld [vmem:[%s1547_s0 + $0x40] sm:$0xff]   ;;  %v1187_v18 = vld [vmem:[%s1547_s0 + $0xb8] sm:$0xff]  }
   0x7   :  { %1063 = vmatpush3.bf16.msra.mxu0 %v1162_v1  ;;  %1154 = vmatpush3.bf16.msra.mxu1 %v1162_v1  ;;  %v1188_v19 = vld [vmem:[%s1547_s0 + $0xc0] sm:$0xff]  }
   0x8   :  { %1064 = vmatprep.subr.bf16.mxu0 %v1163_v4  ;;  %1152 = vmatprep.subr.bf16.mxu1 %v1163_v4 }
   0xb   :  { %1065 = vmatpush3.bf16.msra.mxu0 %v1163_v4  ;;  %1155 = vmatpush3.bf16.msra.mxu1 %v1163_v4 }
   0xe   :  { %1067 = vmatmul.mubr.msk.bf16.vlgmr.msra.gmra.mxu0 %vm273_vm1, %v1165_v5  ;;  %1103 = vmatmul.mubr.msk.bf16.vlgmr.msra.gmra.mxu1 %vm273_vm1, %v1183_v10 }
   0xf   :  { %1070 = vmatprep.mubr.msk.bf16.mxu0 %vm273_vm1, %v1166_v6  ;;  %1106 = vmatprep.mubr.msk.bf16.mxu1 %vm273_vm1, %v1184_v11 }
  0x16   :  { %1071 = vmatmul.mubr.msk.bf16.gmra.mxu0 %vm273_vm1, %v1167_v7  ;;  %1107 = vmatmul.mubr.msk.bf16.gmra.mxu1 %vm273_vm1, %v1185_v14 }
  0x17   :  { %1074 = vmatprep.mubr.msk.bf16.mxu0 %vm273_vm1, %v1168_v8  ;;  %1110 = vmatprep.mubr.msk.bf16.mxu1 %vm273_vm1, %v1186_v15 }
  0x1e   :  { %1075 = vmatmul.mubr.msk.bf16.gmra.mxu0 %vm273_vm1, %v1169_v12  ;;  %1111 = vmatmul.mubr.msk.bf16.gmra.mxu1 %vm273_vm1, %v1187_v18 }
  0x1f   :  { %1078 = vmatprep.mubr.msk.bf16.mxu0 %vm273_vm1, %v1170_v13 }
  0x26   :  { %1079 = vmatmul.mubr.msk.bf16.gmra.mxu0 %vm273_vm1, %v1171_v16 }
  0x27   :  { %1082 = vmatprep.mubr.msk.bf16.mxu0 %vm273_vm1, %v1172_v17 }
  0x28   :  { %10 = vsyncpa [#allocation3], 0  ;;  %1114 = vmatprep.mubr.msk.bf16.mxu1 %vm273_vm1, %v1188_v19  ;;  %v1173_v20 = vld [vmem:[%s1547_s0 + $0x48] sm:$0xff]   ;;  %v1174_v21 = vld [vmem:[%s1547_s0 + $0x50] sm:$0xff]   ;;  %v1226_v37 = vmov 0.0   ;;  %vm1227_vm2 = vmmov 0  }
  0x29   :  { %v1189_v22 = vld [vmem:[%s1547_s0 + $0xc8] sm:$0xff]   ;;  %v1190_v23 = vld [vmem:[%s1547_s0 + $0xd0] sm:$0xff]   ;;  %v1175_v24 = vld [vmem:[%s1547_s0 + $0x58] sm:$0xff]   ;;  %1130 = vmatprep.subr.bf16.mxu1 %v1226_v37  ;;  %vm832_vm3 = vcmask 1041409   ;;  %s1228_s27 = smov [#allocation2]  }
  0x2a   :  { %1115 = vmatmul.mubr.msk.bf16.gmra.mxu1 %vm273_vm1, %v1189_v22  ;;  %v1176_v25 = vld [vmem:[%s1547_s0 + $0x60] sm:$0xff]   ;;  %v1191_v26 = vld [vmem:[%s1547_s0 + $0xd8] sm:$0xff]   ;;  %v1177_v28 = vld [vmem:[%s1547_s0 + $0x68] sm:$0xff]   ;;  %s931_s28 = sshll.u32 %s1228_s27, 4  ;;  %s932_s28 = int_to_ptr.vmem [resolvable:$true] %s931_s28 }
  0x2b   :  { %1118 = vmatprep.mubr.msk.bf16.mxu1 %vm273_vm1, %v1190_v23  ;;  %v1192_v27 = vld [vmem:[%s1547_s0 + $0xe0] sm:$0xff]   ;;  %v1178_v29 = vld [vmem:[%s1547_s0 + $0x70] sm:$0xff]   ;;  %v1193_v30 = vld [vmem:[%s1547_s0 + $0xe8] sm:$0xff]   ;;  %s1204_s29 = scalar_lea.vmem %s932_s28, 32  ;;  %p1209_p1 = scmp.lt.s32.totalorder %s932_s28, %s932_s28 }
  0x2c   :  { %v1194_v31 = vld [vmem:[%s1547_s0 + $0xf0] sm:$0xff]   ;;  %v1179_v32 = vld [vmem:[%s1547_s0 + $0x78] sm:$0xff]   ;;  %v1180_v33 = vld [vmem:[%s1547_s0 + $0x80] sm:$0xff]   ;;  %p1205_p0 = scmp.ne.s32.totalorder %s932_s28, %s1204_s29  ;;  %p1210_p2 = scmp.lt.s32.totalorder %s1204_s29, %s1204_s29 }
  0x2d   :  { %v1195_v34 = vld [vmem:[%s1547_s0 + $0xf8] sm:$0xff]   ;;  %v1181_v35 = vld [vmem:[%s1547_s0 + $0x88] sm:$0xff]   ;;  %v1197_v38 = vld [vmem:[%s1550_s3 + $0x30] sm:$0xff]  }
  0x2e   :  { %1083 = vmatmul.mubr.msk.bf16.gmra.mxu0 %vm273_vm1, %v1173_v20  ;;  %v1196_v36 = vld [vmem:[%s1550_s3 + $0x38] sm:$0xff]   ;;  %v1198_v40 = vld [vmem:[%s1550_s3 + $0x28] sm:$0xff]   ;;  %v1411_v42 = vld [vmem:[%s1549_s2] ss:$0 sm:$0xff]  ;;  %p1211_p3 = por %p1210_p2, %p1209_p1 }
  0x2f   :  { %1086 = vmatprep.mubr.msk.bf16.mxu0 %vm273_vm1, %v1174_v21  ;;  %1131 = vmatpush3.bf16.msra.mxu1 %v1196_v36  ;;  %v1199_v52 = vld [vmem:[%s1550_s3 + $0x20] sm:$0xff]   ;;  %v1200_v60 = vld [vmem:[%s1550_s3 + $0x18] sm:$0xff]   ;;  %v1201_v7 = vld [vmem:[%s1550_s3 + $0x10] sm:$0xff]  }
  0x30   :  { %1132 = vmatprep.subr.bf16.mxu1 %v1226_v37  ;;  %v1202_v16 = vld [vmem:[%s1550_s3 + $0x8] sm:$0xff]   ;;  %p1212_p4 = pnand %p1211_p3, %p1205_p0 }
  0x32   :  { %1119 = vmatmul.mubr.msk.bf16.gmra.mxu1 %vm273_vm1, %v1191_v26 }
  0x33   :  { %1122 = vmatprep.mubr.msk.bf16.mxu1 %vm273_vm1, %v1192_v27  ;;  %1133 = vmatpush3.bf16.msra.mxu1 %v1197_v38  ;;  %v1203_v27 = vld [vmem:[%s1550_s3] sm:$0xff]  }
  0x34   :  { %1134 = vmatprep.subr.bf16.mxu1 %v1226_v37 }
  0x36   :  { %1087 = vmatmul.mubr.msk.bf16.gmra.mxu0 %vm273_vm1, %v1175_v24 }
  0x37   :  { %1090 = vmatprep.mubr.msk.bf16.mxu0 %vm273_vm1, %v1176_v25  ;;  %1135 = vmatpush3.bf16.msra.mxu1 %v1198_v40 }
  0x38   :  { %1136 = vmatprep.subr.bf16.mxu1 %v1226_v37 }
  0x3a   :  { %1123 = vmatmul.mubr.msk.bf16.gmra.mxu1 %vm273_vm1, %v1193_v30 }
  0x3b   :  { %1126 = vmatprep.mubr.msk.bf16.mxu1 %vm273_vm1, %v1194_v31  ;;  %1137 = vmatpush3.bf16.msra.mxu1 %v1199_v52 }
  0x3c   :  { %1138 = vmatprep.subr.bf16.mxu1 %v1226_v37 }
  0x3e   :  { %1091 = vmatmul.mubr.msk.bf16.gmra.mxu0 %vm273_vm1, %v1177_v28 }
  0x3f   :  { %1094 = vmatprep.mubr.msk.bf16.mxu0 %vm273_vm1, %v1178_v29  ;;  %1139 = vmatpush3.bf16.msra.mxu1 %v1200_v60 }
  0x40   :  { %1140 = vmatprep.subr.bf16.mxu1 %v1226_v37 }
  0x42   :  { %1127 = vmatmul.mubr.msk.bf16.gmra.mxu1 %vm273_vm1, %v1195_v34 }
  0x43   :  { %1141 = vmatpush3.bf16.msra.mxu1 %v1201_v7  ;;  %1146 = vmatprep.mubr.msk.bf16.mxu1 %vm1227_vm2, %v1226_v37 }
  0x44   :  { %1142 = vmatprep.subr.bf16.mxu1 %v1226_v37 }
  0x46   :  { %1095 = vmatmul.mubr.msk.bf16.gmra.mxu0 %vm273_vm1, %v1179_v32 }
  0x47   :  { %1098 = vmatprep.mubr.msk.bf16.mxu0 %vm273_vm1, %v1180_v33  ;;  %1143 = vmatpush3.bf16.msra.mxu1 %v1202_v16 }
  0x48   :  { %1144 = vmatprep.subr.bf16.mxu1 %v1226_v37 }
  0x4b   :  { %1145 = vmatpush3.bf16.msra.mxu1 %v1203_v27 }
  0x4e   :  { %1099 = vmatmul.mubr.msk.bf16.gmra.mxu0 %vm273_vm1, %v1181_v35 }
  0xce   :  { %v1068_v39 = vpop.f32.mrf.mxu0  ;;  %v1426_v62 = vpop.f32.mrf.mxu1 }
  0xcf   :  { %v417_v46 = vadd.f32 %v1068_v39, %v1411_v42 }
  0xd0   :  { %v408_v41 = vpop.f32.mrf.mxu0  ;;  %v1435_v9 = vpop.f32.mrf.mxu1 }
  0xd1   :  { %v409_v44 = vadd.f32 %v1411_v42, %v408_v41  ;;  %v665_v54 = vmax.f32 %v417_v46, 0.0 }
  0xd2   :  { %v1069_v43 = vpop.f32.mrf.mxu0  ;;  %v1442_v18 = vpop.f32.mrf.mxu1 }
  0xd3   :  { %v663_v49 = vmax.f32 %v409_v44, 0.0  ;;  %v420_v50 = vadd.f32 %v1069_v43, %v1411_v42 }
  0xd4   :  { %v411_v45 = vpop.f32.mrf.mxu0  ;;  %v1451_v29 = vpop.f32.mrf.mxu1 }
  0xd5   :  { %v412_v47 = vadd.f32 %v1411_v42, %v411_v45  ;;  %v666_v58 = vmax.f32 %v420_v50, 0.0 }
  0xd6   :  { %v1072_v48 = vpop.f32.mrf.mxu0  ;;  %v1455_v38 = vpop.f32.mrf.mxu1 }
  0xd7   :  { %v664_v51 = vmax.f32 %v412_v47, 0.0  ;;  %v433_v63 = vadd.f32 %v1072_v48, %v1411_v42 }
  0xd8   :  { %v424_v53 = vpop.f32.mrf.mxu0 }
  0xd9   :  { %v727_v55 = vadd.f32 %v664_v51, %v663_v49  ;;  %v425_v56 = vadd.f32 %v1411_v42, %v424_v53  ;;  %v669_v10 = vmax.f32 %v433_v63, 0.0  ;;  %v1460_v49 = vpop.f32.mrf.mxu1 }
  0xda   :  { %v1073_v57 = vpop.f32.mrf.mxu0 }
  0xdb   :  { %v728_v59 = vadd.f32 %v727_v55, %v665_v54  ;;  %v667_v0 = vmax.f32 %v425_v56, 0.0  ;;  %v436_v5 = vadd.f32 %v1073_v57, %v1411_v42  ;;  %v1463_v56 = vpop.f32.mrf.mxu1 }
  0xdc   :  { %v427_v61 = vpop.f32.mrf.mxu0 }
  0xdd   :  { %v729_v1 = vadd.f32 %v728_v59, %v666_v58  ;;  %v428_v2 = vadd.f32 %v1411_v42, %v427_v61  ;;  %v670_v14 = vmax.f32 %v436_v5, 0.0 }
  0xde   :  { %v1076_v3 = vpop.f32.mrf.mxu0 }
  0xdf   :  { %v730_v4 = vadd.f32 %v729_v1, %v667_v0  ;;  %v668_v6 = vmax.f32 %v428_v2, 0.0  ;;  %v449_v19 = vadd.f32 %v1076_v3, %v1411_v42  ;;  %v1468_v3 = vpop.f32.mrf.mxu1 }
  0xe0   :  { %v440_v8 = vpop.f32.mrf.mxu0 }
  0xe1   :  { %v731_v11 = vadd.f32 %v730_v4, %v668_v6  ;;  %v441_v12 = vadd.f32 %v1411_v42, %v440_v8  ;;  %v673_v30 = vmax.f32 %v449_v19, 0.0 }
  0xe2   :  { %v1077_v13 = vpop.f32.mrf.mxu0 }
  0xe3   :  { %v732_v15 = vadd.f32 %v731_v11, %v669_v10  ;;  %v671_v20 = vmax.f32 %v441_v12, 0.0  ;;  %v452_v25 = vadd.f32 %v1077_v13, %v1411_v42  ;;  %v1471_v12 = vpop.f32.mrf.mxu1 }
  0xe4   :  { %v443_v17 = vpop.f32.mrf.mxu0 }
  0xe5   :  { %v733_v21 = vadd.f32 %v732_v15, %v670_v14  ;;  %v444_v22 = vadd.f32 %v1411_v42, %v443_v17  ;;  %v674_v34 = vmax.f32 %v452_v25, 0.0 }
  0xe6   :  { %v1080_v23 = vpop.f32.mrf.mxu0 }
  0xe7   :  { %v734_v24 = vadd.f32 %v733_v21, %v671_v20  ;;  %v672_v26 = vmax.f32 %v444_v22, 0.0  ;;  %v465_v39 = vadd.f32 %v1080_v23, %v1411_v42  ;;  %v1476_v23 = vpop.f32.mrf.mxu1 }
  0xe8   :  { %v456_v28 = vpop.f32.mrf.mxu0 }
  0xe9   :  { %v735_v31 = vadd.f32 %v734_v24, %v672_v26  ;;  %v457_v32 = vadd.f32 %v1411_v42, %v456_v28  ;;  %v677_v37 = vmax.f32 %v465_v39, 0.0 }
  0xea   :  { %v1081_v33 = vpop.f32.mrf.mxu0 }
  0xeb   :  { %v736_v35 = vadd.f32 %v735_v31, %v673_v30  ;;  %v675_v40 = vmax.f32 %v457_v32, 0.0  ;;  %v468_v46 = vadd.f32 %v1081_v33, %v1411_v42  ;;  %v1479_v32 = vpop.f32.mrf.mxu1 }
  0xec   :  { %v459_v36 = vpop.f32.mrf.mxu0 }
  0xed   :  { %v737_v41 = vadd.f32 %v736_v35, %v674_v34  ;;  %v460_v43 = vadd.f32 %v1411_v42, %v459_v36  ;;  %v678_v53 = vmax.f32 %v468_v46, 0.0 }
  0xee   :  { %v1084_v44 = vpop.f32.mrf.mxu0 }
  0xef   :  { %v738_v45 = vadd.f32 %v737_v41, %v675_v40  ;;  %v676_v47 = vmax.f32 %v460_v43, 0.0  ;;  %v481_v57 = vadd.f32 %v1084_v44, %v1411_v42 }
  0xf0   :  { %v472_v48 = vpop.f32.mrf.mxu0 }
  0xf1   :  { %v739_v50 = vadd.f32 %v738_v45, %v676_v47  ;;  %v473_v51 = vadd.f32 %v1411_v42, %v472_v48  ;;  %v681_v4 = vmax.f32 %v481_v57, 0.0  ;;  %v1484_v45 = vpop.f32.mrf.mxu1 }
  0xf2   :  { %v1085_v52 = vpop.f32.mrf.mxu0 }
  0xf3   :  { %v740_v54 = vadd.f32 %v739_v50, %v677_v37  ;;  %v679_v58 = vmax.f32 %v473_v51, 0.0  ;;  %v484_v0 = vadd.f32 %v1085_v52, %v1411_v42 }
  0xf4   :  { %v475_v55 = vpop.f32.mrf.mxu0 }
  0xf5   :  { %v741_v59 = vadd.f32 %v740_v54, %v678_v53  ;;  %v476_v60 = vadd.f32 %v1411_v42, %v475_v55  ;;  %v682_v8 = vmax.f32 %v484_v0, 0.0  ;;  %v1487_v53 = vpop.f32.mrf.mxu1 }
  0xf6   :  { %v1088_v61 = vpop.f32.mrf.mxu0 }
  0xf7   :  { %v742_v63 = vadd.f32 %v741_v59, %v679_v58  ;;  %v680_v1 = vmax.f32 %v476_v60, 0.0  ;;  %v497_v13 = vadd.f32 %v1088_v61, %v1411_v42 }
  0xf8   :  { %v488_v2 = vpop.f32.mrf.mxu0 }
  0xf9   :  { %v743_v5 = vadd.f32 %v742_v63, %v680_v1  ;;  %v489_v6 = vadd.f32 %v1411_v42, %v488_v2  ;;  %v685_v24 = vmax.f32 %v497_v13, 0.0  ;;  %v600_v1 = vpop.f32.mrf.mxu1 }
  0xfa   :  { %v1089_v7 = vpop.f32.mrf.mxu0 }
  0xfb   :  { %v744_v10 = vadd.f32 %v743_v5, %v681_v4  ;;  %v683_v14 = vmax.f32 %v489_v6, 0.0  ;;  %v500_v20 = vadd.f32 %v1089_v7, %v1411_v42 }
  0xfc   :  { %v491_v11 = vpop.f32.mrf.mxu0 }
  0xfd   :  { %v745_v15 = vadd.f32 %v744_v10, %v682_v8  ;;  %v492_v16 = vadd.f32 %v1411_v42, %v491_v11  ;;  %v686_v28 = vmax.f32 %v500_v20, 0.0  ;;  %v1117_v11 = vpop.f32.mrf.mxu1 }
  0xfe   :  { %v1092_v17 = vpop.f32.mrf.mxu0 }
  0xff   :  { %v746_v19 = vadd.f32 %v745_v15, %v683_v14  ;;  %v684_v21 = vmax.f32 %v492_v16, 0.0  ;;  %v513_v33 = vadd.f32 %v1092_v17, %v1411_v42  ;;  %v603_v20 = vpop.f32.mrf.mxu1 }
 0x100   :  { %v504_v22 = vpop.f32.mrf.mxu0 }
 0x101   :  { %v747_v25 = vadd.f32 %v746_v19, %v684_v21  ;;  %v505_v26 = vadd.f32 %v1411_v42, %v504_v22  ;;  %v689_v46 = vmax.f32 %v513_v33, 0.0  ;;  %v553_v22 = vadd.f32 %v1411_v42, %v1435_v9 }
 0x102   :  { %v1093_v27 = vpop.f32.mrf.mxu0 }
 0x103   :  { %v748_v30 = vadd.f32 %v747_v25, %v685_v24  ;;  %v687_v34 = vmax.f32 %v505_v26, 0.0  ;;  %v516_v41 = vadd.f32 %v1093_v27, %v1411_v42  ;;  %v556_v27 = vadd.f32 %v1411_v42, %v1451_v29 }
 0x104   :  { %v507_v31 = vpop.f32.mrf.mxu0  ;;  %v572_v29 = vadd.f32 %v1411_v42, %v1468_v3  ;;  %v588_v3 = vadd.f32 %v1411_v42, %v1484_v45  ;;  %v604_v45 = vadd.f32 %v1411_v42, %v603_v20 }
 0x105   :  { %v749_v35 = vadd.f32 %v748_v30, %v686_v28  ;;  %v508_v36 = vadd.f32 %v1411_v42, %v507_v31  ;;  %v690_v50 = vmax.f32 %v516_v41, 0.0  ;;  %v1120_v28 = vpop.f32.mrf.mxu1  ;;  %v561_v30 = vadd.f32 %v1426_v62, %v1411_v42 }
 0x106   :  { %v1096_v39 = vpop.f32.mrf.mxu0  ;;  %v699_v31 = vmax.f32 %v553_v22, 0.0  ;;  %v569_v41 = vadd.f32 %v1411_v42, %v1460_v49  ;;  %v577_v62 = vadd.f32 %v1455_v38, %v1411_v42  ;;  %v585_v49 = vadd.f32 %v1411_v42, %v1476_v23 }
 0x107   :  { %v750_v40 = vadd.f32 %v749_v35, %v687_v34  ;;  %v688_v43 = vmax.f32 %v508_v36, 0.0  ;;  %v529_v54 = vadd.f32 %v1096_v39, %v1411_v42  ;;  %v564_v34 = vadd.f32 %v1442_v18, %v1411_v42  ;;  %v616_v39 = vpop.f32.mrf.mxu1 }
 0x108   :  { %v520_v44 = vpop.f32.mrf.mxu0  ;;  %v700_v35 = vmax.f32 %v556_v27, 0.0  ;;  %v593_v38 = vadd.f32 %v1471_v12, %v1411_v42  ;;  %v601_v23 = vadd.f32 %v1411_v42, %v600_v1  ;;  %v609_v12 = vadd.f32 %v1487_v53, %v1411_v42 }
 0x109   :  { %v751_v47 = vadd.f32 %v750_v40, %v688_v43  ;;  %v521_v48 = vadd.f32 %v1411_v42, %v520_v44  ;;  %v693_v2 = vmax.f32 %v529_v54, 0.0  ;;  %v701_v40 = vmax.f32 %v561_v30, 0.0 }
 0x10a   :  { %v1097_v37 = vpop.f32.mrf.mxu0  ;;  %v702_v43 = vmax.f32 %v564_v34, 0.0 }
 0x10b   :  { %v752_v51 = vadd.f32 %v751_v47, %v689_v46  ;;  %v691_v55 = vmax.f32 %v521_v48, 0.0  ;;  %v532_v61 = vadd.f32 %v1097_v37, %v1411_v42  ;;  %v1121_v46 = vpop.f32.mrf.mxu1  ;;  %v703_v47 = vmax.f32 %v569_v41, 0.0 }
 0x10c   :  { %v523_v52 = vpop.f32.mrf.mxu0  ;;  %v580_v37 = vadd.f32 %v1463_v56, %v1411_v42  ;;  %v596_v56 = vadd.f32 %v1479_v32, %v1411_v42  ;;  %v712_v32 = vmax.f32 %v604_v45, 0.0  ;;  %v628_v30 = vadd.f32 %v1121_v46, %v1411_v42 }
 0x10d   :  { %v753_v57 = vadd.f32 %v752_v51, %v690_v50  ;;  %v524_v58 = vadd.f32 %v1411_v42, %v523_v52  ;;  %v694_v6 = vmax.f32 %v532_v61, 0.0  ;;  %v704_v50 = vmax.f32 %v572_v29, 0.0  ;;  %v619_v51 = vpop.f32.mrf.mxu1 }
 0x10e   :  { %v1100_v59 = vpop.f32.mrf.mxu0  ;;  %v705_v52 = vmax.f32 %v577_v62, 0.0 }
 0x10f   :  { %v754_v60 = vadd.f32 %v753_v57, %v691_v55  ;;  %v692_v63 = vmax.f32 %v524_v58, 0.0  ;;  %v545_v14 = vadd.f32 %v1100_v59, %v1411_v42  ;;  %v706_v55 = vmax.f32 %v580_v37, 0.0  ;;  %v1124_v58 = vpop.f32.mrf.mxu1 }
 0x110   :  { %v536_v0 = vpop.f32.mrf.mxu0  ;;  %v707_v59 = vmax.f32 %v585_v49, 0.0  ;;  %v641_v41 = vadd.f32 %v1124_v58, %v1411_v42 }
 0x111   :  { %v755_v4 = vadd.f32 %v754_v60, %v692_v63  ;;  %v537_v8 = vadd.f32 %v1411_v42, %v536_v0  ;;  %v697_v21 = vmax.f32 %v545_v14, 0.0  ;;  %v708_v63 = vmax.f32 %v588_v3, 0.0  ;;  %v632_v0 = vpop.f32.mrf.mxu1 }
 0x112   :  { %v1101_v5 = vpop.f32.mrf.mxu0 }
 0x113   :  { %v756_v7 = vadd.f32 %v755_v4, %v693_v2  ;;  %v695_v16 = vmax.f32 %v537_v8, 0.0  ;;  %v548_v17 = vadd.f32 %v1101_v5, %v1411_v42  ;;  %v709_v2 = vmax.f32 %v593_v38, 0.0 }
 0x114   :  { %v539_v10 = vpop.f32.mrf.mxu0  ;;  %v710_v5 = vmax.f32 %v596_v56, 0.0  ;;  %v711_v8 = vmax.f32 %v601_v23, 0.0 }
 0x115   :  { %v1493_v13 = vadd.f32 %v756_v7, %v694_v6  ;;  %v540_v15 = vadd.f32 %v1411_v42, %v539_v10  ;;  %v698_v25 = vmax.f32 %v548_v17, 0.0  ;;  %v1125_v7 = vpop.f32.mrf.mxu1  ;;  %v713_v17 = vmax.f32 %v609_v12, 0.0 }
 0x116   :  { %v644_v46 = vadd.f32 %v1125_v7, %v1411_v42 }
 0x117   :  { %v696_v19 = vmax.f32 %v540_v15, 0.0  ;;  %v612_v15 = vadd.f32 %v1117_v11, %v1411_v42 }
 0x119   :  { %v764_v24 = vadd.f32 %v696_v19, %v695_v16  ;;  %v635_v16 = vpop.f32.mrf.mxu1  ;;  %v714_v1 = vmax.f32 %v612_v15, 0.0 }
 0x11b   :  { %v765_v26 = vadd.f32 %v764_v24, %v697_v21  ;;  %v617_v21 = vadd.f32 %v1411_v42, %v616_v39  ;;  %v620_v24 = vadd.f32 %v1411_v42, %v619_v51  ;;  %v1128_v20 = vpop.f32.mrf.mxu1  ;;  %v722_v51 = vmax.f32 %v644_v46, 0.0 }
 0x11c   :  { %v657_v49 = vadd.f32 %v1128_v20, %v1411_v42 }
 0x11d   :  { %v766_v33 = vadd.f32 %v765_v26, %v698_v25  ;;  %v625_v25 = vadd.f32 %v1120_v28, %v1411_v42  ;;  %v715_v26 = vmax.f32 %v617_v21, 0.0  ;;  %v648_v11 = vpop.f32.mrf.mxu1 }
 0x11e   :  { %v649_v37 = vadd.f32 %v1411_v42, %v648_v11 }
 0x11f   :  { %v767_v36 = vadd.f32 %v766_v33, %v699_v31  ;;  %v716_v31 = vmax.f32 %v620_v24, 0.0  ;;  %v717_v33 = vmax.f32 %v625_v25, 0.0 }
 0x121   :  { %v768_v9 = vadd.f32 %v767_v36, %v700_v35  ;;  %v633_v35 = vadd.f32 %v1411_v42, %v632_v0  ;;  %v718_v36 = vmax.f32 %v628_v30, 0.0 }
 0x123   :  { %v769_v44 = vadd.f32 %v768_v9, %v701_v40  ;;  %v636_v40 = vadd.f32 %v1411_v42, %v635_v16  ;;  %v1129_v9 = vpop.f32.mrf.mxu1 }
 0x124   :  { %v660_v38 = vadd.f32 %v1129_v9, %v1411_v42 }
 0x125   :  { %v770_v48 = vadd.f32 %v769_v44, %v702_v43  ;;  %v719_v43 = vmax.f32 %v633_v35, 0.0  ;;  %v758_v44 = vrot.slane %v1493_v13, 4  ;;  %v720_v62 = vmax.f32 %v636_v40, 0.0 }
 0x127   :  { %v771_v18 = vadd.f32 %v770_v48, %v703_v47  ;;  %v651_v47 = vpop.f32.mrf.mxu1  ;;  %v721_v48 = vmax.f32 %v641_v41, 0.0 }
 0x129   :  { %v772_v54 = vadd.f32 %v771_v18, %v704_v50  ;;  %v759_v50 = vadd.f32 %v758_v44, %v1493_v13 }
 0x12b   :  { %v773_v57 = vadd.f32 %v772_v54, %v705_v52  ;;  %v652_v54 = vadd.f32 %v1411_v42, %v651_v47  ;;  %v760_v3 = vrot.slane %v759_v50, 2 }
 0x12d   :  { %v774_v60 = vadd.f32 %v773_v57, %v706_v55  ;;  %v723_v55 = vmax.f32 %v649_v37, 0.0  ;;  %v761_v56 = vadd.f32 %v760_v3, %v759_v50 }
 0x12f   :  { %v775_v61 = vadd.f32 %v774_v60, %v707_v59  ;;  %v724_v59 = vmax.f32 %v652_v54, 0.0  ;;  %v725_v60 = vmax.f32 %v657_v49, 0.0  ;;  %v762_v13 = vrot.slane %v761_v56, 1 }
 0x131   :  { %v776_v4 = vadd.f32 %v775_v61, %v708_v63  ;;  %v726_v63 = vmax.f32 %v660_v38, 0.0 }
 0x133   :  { %v777_v6 = vadd.f32 %v776_v4, %v709_v2 }
 0x135   :  { %v778_v10 = vadd.f32 %v777_v6, %v710_v5  ;;  %v763_v5 = vadd.f32 %v762_v13, %v761_v56 }
 0x137   :  { %v779_v14 = vadd.f32 %v778_v10, %v711_v8  ;;  %v801_v7 = vmul.f32 0.00390625, %v763_v5 }
 0x139   :  { %v780_v19 = vadd.f32 %v779_v14, %v712_v32  ;;  %v803_v10 = vpack.c.bf16 %v801_v7, %v801_v7 }
 0x13b   :  { %v781_v22 = vadd.f32 %v780_v19, %v713_v17  ;;  %v830_v42 = vunpack.c.l.b16 %v803_v10  ;;  %v1007_v19 = vld [vmem:[%s1551_s4] ss:$0 sm:$0xff] }
 0x13d   :  { %v782_v53 = vadd.f32 %v781_v22, %v714_v1 }
 0x13f   :  { %v783_v27 = vadd.f32 %v782_v53, %v715_v26 }
 0x141   :  { %v784_v34 = vadd.f32 %v783_v27, %v716_v31 }
 0x143   :  { %v785_v39 = vadd.f32 %v784_v34, %v717_v33 }
 0x145   :  { %v786_v28 = vadd.f32 %v785_v39, %v718_v36 }
 0x147   :  { %v787_v29 = vadd.f32 %v786_v28, %v719_v43 }
 0x149   :  { %v788_v18 = vadd.f32 %v787_v29, %v720_v62 }
 0x14b   :  { %v789_v52 = vadd.f32 %v788_v18, %v721_v48 }
 0x14d   :  { %v790_v57 = vadd.f32 %v789_v52, %v722_v51 }
 0x14f   :  { %v791_v58 = vadd.f32 %v790_v57, %v723_v55 }
 0x151   :  { %v792_v61 = vadd.f32 %v791_v58, %v724_v59 }
 0x153   :  { %v793_v0 = vadd.f32 %v792_v61, %v725_v60 }
 0x155   :  { %v794_v2 = vadd.f32 %v793_v0, %v726_v63 }
 0x157   :  { %v795_v4 = vrot.slane %v794_v2, 4 }
 0x159   :  { %v796_v23 = vadd.f32 %v795_v4, %v794_v2 }
 0x15b   :  { %v797_v6 = vrot.slane %v796_v23, 2 }
 0x15d   :  { %v798_v45 = vadd.f32 %v797_v6, %v796_v23 }
 0x15f   :  { %v799_v12 = vrot.slane %v798_v45, 1 }
 0x161   :  { %v800_v8 = vadd.f32 %v799_v12, %v798_v45 }
 0x163   :  { %v802_v14 = vmul.f32 0.00390625, %v800_v8 }
 0x165   :  { %v804_v15 = vpack.c.bf16 %v802_v14, %v802_v14 }
 0x167   :  { %v831_v32 = vunpack.c.l.b16 %v804_v15 }
 0x169   :  { %v833_v16 = vsel %vm832_vm3, %v831_v32, %v830_v42 }
 0x16a   :  { %v834_v17 = vpack.c.b16 %v833_v16, %v833_v16 }
 0x16c   :  { %1147 = vmatmul.mubr.bf16.vlgmr.msra.gmra.mxu1 %v834_v17 }
 0x22c   :  { %v918_v21 = vpop.f32.mrf.mxu1 }
 0x22d   :  { %v919_v1 = vadd.f32 %v1007_v19, %v918_v21 }
 0x22e   :  { %v1148_v22 = vpop.f32.mrf.mxu1 }
 0x22f   :  { %924 = vst [vmem:[#allocation2] sm:$0x3] %v919_v1 }
 0x230   :  { %v921_v24 = vpop.f32.mrf.mxu1 }
 0x231   :  { %1215 = shalt.err (!%p1212_p4)
}
 0x232   :  { %934 = dma.vmem_to_hbm [thread:$0]  %s932_s28, 32, %s1552_s5, [#allocation3]   ;;  %v1149_v20 = vpop.f32.mrf.mxu1 }
 0x233   :  { %1224 = dma.done.wait [#allocation3], 32  }
 0x234   :  { %1225 = vsyncadd [#allocation3], 4294967264 }
 0x235   :  { %938 = vsyncpa [#allocation3], 1 }

</bundles_post_ra>
